<compile_context>
chip_gen: v5e
topology: v5e:2x2
jax: 0.10.0
libtpu: 0.0.40
codegen_flags: <defaults>
</compile_context>

<pallas_src>
import math

import jax
import jax.numpy as jnp
from jax.experimental import pallas as pl
from jax.experimental.pallas import tpu as pltpu


def _round_up(a: int, b: int) -> int:
    return ((a + b - 1) // b) * b


def _min_sublane(dtype) -> int:
    """Minimum sublane multiple for the packed dtype (vregs pack along sublanes)."""
    itemsize = jnp.dtype(dtype).itemsize
    if itemsize >= 4:
        return 8
    if itemsize == 2:
        return 16
    return 32


# --------------------------------------------------------------------------- #
# Kernels                                                                      #
# --------------------------------------------------------------------------- #
def _matmul_kernel_acc(x_ref, w_ref, o_ref, acc_ref):
    """x_ref: (tm, tk), w_ref: (tk, tn), o_ref: (tm, tn), acc_ref: (tm, tn) f32."""
    k = pl.program_id(2)

    @pl.when(k == 0)
    def _init():
        acc_ref[...] = jnp.zeros_like(acc_ref)

    acc_ref[...] += jnp.dot(
        x_ref[...], w_ref[...], preferred_element_type=jnp.float32
    )

    @pl.when(k == pl.num_programs(2) - 1)
    def _finalize():
        o_ref[...] = acc_ref[...].astype(o_ref.dtype)


def _matmul_kernel_f32_direct(x_ref, w_ref, o_ref):
    """f32 output: accumulate directly into the resident output tile (no scratch)."""
    @pl.when(pl.program_id(2) == 0)
    def _init():
        o_ref[...] = jnp.zeros_like(o_ref)

    o_ref[...] += jnp.dot(
        x_ref[...], w_ref[...], preferred_element_type=jnp.float32
    )


# --------------------------------------------------------------------------- #
# Config                                                                       #
# --------------------------------------------------------------------------- #
def _tpu_config(dtype):
    """(tm, tn, tk, vmem_limit_bytes, num_tensorcores) per TPU generation."""
    kind = jax.devices()[0].device_kind.lower()
    itemsize = jnp.dtype(dtype).itemsize
    tk = 1024 if itemsize <= 2 else 512
    if ("v5 lite" in kind) or ("v5e" in kind) or ("v5lite" in kind):
        # v5e: scoped VMEM default is only ~16 MiB of 128 MiB -> raise explicitly;
        # big tiles still decompose into multiple 128x128 MXU passes but cut HBM
        # re-streaming.
        return 512, 512, tk, 80 * 1024 * 1024, 1
    if "7" in kind:
        # v7x: 64 MiB physical VMEM, 2 TensorCores -> stay under a ~48 MiB scoped cap.
        return 512, 512, tk, 48 * 1024 * 1024, 2
    # v6e (and unknown/newer): 128 MiB VMEM, single TC.
    return 512, 512, tk, 96 * 1024 * 1024, 1


def _vmem_footprint(tm, tn, tk, itemsize, w_bufs, use_acc):
    x_b = 2 * tm * tk * itemsize            # double-buffered x tiles
    w_b = w_bufs * tk * tn * itemsize       # weight tiles (2 or 3 buffers)
    o_b = 2 * tm * tn * itemsize            # double-buffered output tiles
    acc_b = tm * tn * 4 if use_acc else 0   # f32 accumulator scratch
    return x_b + w_b + o_b + acc_b


# --------------------------------------------------------------------------- #
# Wrapper                                                                      #
# --------------------------------------------------------------------------- #
def filtered_linear_forward(x, weight, filter=None, anti_filter=None,
                            *, tm=None, tn=None, tk=None):
    """Forward of FilteredLinear: y = x @ weight.T.

    `filter` / `anti_filter` are accepted for API parity with the PyTorch module
    but unused here (they only rescale gradients in the backward pass).
    """
    # TODO(synk): the gradient filtering (LAMBDA_FILTER / LAMBDA_ANTI_FILTER) is a
    # backward-pass autograd hook; in JAX it belongs in a jax.custom_vjp, not here.
    M, K = x.shape
    N, Kw = weight.shape
    assert K == Kw, "in_features mismatch"

    dtype = x.dtype
    itemsize = jnp.dtype(dtype).itemsize
    sub = _min_sublane(dtype)

    dtm, dtn, dtk, vmem_limit, n_cores = _tpu_config(dtype)

    small_m = M <= 64
    if small_m:
        # Weight-streaming GEMV regime: bound is HBM weight bandwidth, so maximize
        # the per-step weight tile.
        dtn = max(dtn, 1024)
        dtk = max(dtk, 2048 if itemsize <= 2 else 1024)

    tm = dtm if tm is None else tm
    tn = dtn if tn is None else tn
    tk = dtk if tk is None else tk

    # Validate user-supplied / default tiles against the (sublane, 128) layout rule.
    if tm % sub != 0:
        raise ValueError(f"tm={tm} must be a multiple of {sub} for dtype {dtype}")
    if tn % 128 != 0 or tk % 128 != 0:
        raise ValueError(f"tn={tn} and tk={tk} must be multiples of 128")

    # Clamp tiles to the (padded) problem size.
    tm = min(tm, _round_up(M, sub))
    tn = min(tn, _round_up(N, 128))
    tk = min(tk, _round_up(K, 128))

    # v7x megacore guard: if the M axis has a single step, make sure the N axis
    # gets >= 2 parallel steps so the 2nd TensorCore is not idle.
    if n_cores >= 2 and _round_up(M, sub) <= tm:
        n128 = _round_up(N, 128) // 128
        if n128 >= 2 and _round_up(N, 128) <= tn:
            tn = ((n128 + 1) // 2) * 128

    use_f32_direct = jnp.dtype(dtype) == jnp.float32
    w_bufs_hint = 3 if small_m else 2

    # Keep the pipelined footprint within ~75% of the scoped VMEM budget by
    # shrinking tk, then tn, if necessary (only triggers for huge user tiles).
    budget = int(0.75 * vmem_limit)
    while (_vmem_footprint(tm, tn, tk, itemsize, w_bufs_hint, not use_f32_direct)
           > budget and tk > 128):
        tk = max(128, (tk // 2 // 128) * 128)
    while (_vmem_footprint(tm, tn, tk, itemsize, w_bufs_hint, not use_f32_direct)
           > budget and tn > 128):
        tn = max(128, (tn // 2 // 128) * 128)

    Mp, Np, Kp = _round_up(M, tm), _round_up(N, tn), _round_up(K, tk)

    # Zero-pad (exact for a matmul over the contraction dim) and pre-transpose the
    # static weight once to (K, N) so the kernel runs the canonical contraction.
    xp = x if (Mp == M and Kp == K) else jnp.pad(x, ((0, Mp - M), (0, Kp - K)))
    wt = weight.T  # (K, N)
    wtp = wt if (Kp == K and Np == N) else jnp.pad(wt, ((0, Kp - K), (0, Np - N)))

    grid = (Mp // tm, Np // tn, Kp // tk)
    n_steps, k_steps = grid[1], grid[2]

    # Weight BlockSpec: lane-dense in N; deeper buffering only when it can help
    # (small-M streaming with enough steps to overlap).
    if small_m and (n_steps * k_steps) >= 3:
        w_spec = pl.BlockSpec((tk, tn), lambda i, j, k: (k, j),
                              pipeline_mode=pl.Buffered(3))
    else:
        w_spec = pl.BlockSpec((tk, tn), lambda i, j, k: (k, j))

    kernel = _matmul_kernel_f32_direct if use_f32_direct else _matmul_kernel_acc
    scratch = [] if use_f32_direct else [pltpu.VMEM((tm, tn), jnp.float32)]

    cost = pl.CostEstimate(
        flops=2 * M * N * K,
        transcendentals=0,
        bytes_accessed=int(
            (Mp * Kp * (Np // tn)      # x streamed once per N tile
             + Np * Kp * (Mp // tm)    # weight streamed once per M tile
             + Mp * Np) * itemsize     # output written once
        ),
    )

    out = pl.pallas_call(
        kernel,
        out_shape=jax.ShapeDtypeStruct((Mp, Np), dtype),
        grid_spec=pltpu.PrefetchScalarGridSpec(
            num_scalar_prefetch=0,
            grid=grid,
            in_specs=[
                pl.BlockSpec((tm, tk), lambda i, j, k: (i, k)),  # x tile
                w_spec,                                          # w.T tile (K, N)
            ],
            out_specs=pl.BlockSpec((tm, tn), lambda i, j, k: (i, j)),
            scratch_shapes=scratch,
        ),
        compiler_params=pltpu.CompilerParams(
            dimension_semantics=("parallel", "parallel", "arbitrary"),
            vmem_limit_bytes=vmem_limit,
        ),
        cost_estimate=cost,
    )(xp, wtp)

    if Mp != M or Np != N:
        out = out[:M, :N]
    return out


def init_filtered_linear_weight(key, in_features, out_features, dtype=jnp.float32):
    """Deterministic kaiming_uniform_(a=sqrt(5)) init, matching PyTorch.

    gain = sqrt(2/(1+a^2)) = sqrt(1/3); bound = gain*sqrt(3/fan_in) = 1/sqrt(fan_in)
    """
    bound = 1.0 / math.sqrt(in_features)
    return jax.random.uniform(
        key, (out_features, in_features), dtype=dtype, minval=-bound, maxval=bound
    )


if __name__ == "__main__":
    batch = 8
    in_features = 32
    out_features = 32

    key = jax.random.PRNGKey(0)
    kx, kw, kf, kaf = jax.random.split(key, 4)

    x = jax.random.normal(kx, (batch, in_features), dtype=jnp.float32)
    weight = init_filtered_linear_weight(kw, in_features, out_features)
    # filter / anti_filter are (out_features, out_features): they left-multiply
    # grad_weight (out_features, in_features) in the PyTorch backward (unused here).
    filt = jax.random.normal(kf, (out_features, out_features), dtype=jnp.float32)
    anti_filt = jnp.eye(out_features, dtype=jnp.float32) - filt

    y = filtered_linear_forward(x, weight, filt, anti_filt)
    y = jax.block_until_ready(y)

    # Reference check against plain JAX.
    y_ref = x @ weight.T
    assert y.shape == (batch, out_features)
    assert jnp.allclose(y, y_ref, atol=1e-5, rtol=1e-5), "mismatch vs reference"

    print("KERNEL_OK")
</pallas_src>

<mosaic_0001>
module attributes {stable_mosaic.version = 11 : i64} {
  func.func @_matmul_kernel_f32_direct(%arg0: i32, %arg1: i32, %arg2: i32, %arg3: memref<8x128xf32, #tpu.memory_space<vmem>>, %arg4: memref<128x128xf32, #tpu.memory_space<vmem>>, %arg5: memref<8x128xf32, #tpu.memory_space<vmem>>) attributes {dimension_semantics = [#tpu.dimension_semantics<parallel>, #tpu.dimension_semantics<parallel>, #tpu.dimension_semantics<arbitrary>], iteration_bounds = array<i64: 1, 1, 1>, scalar_prefetch = 0 : i64, scratch_operands = 0 : i64, tpu.core_type = #tpu.core_type<tc>, window_params = [{transform_indices = @transform_0, window_bounds = array<i64: 8, 128>}, {transform_indices = @transform_1, window_bounds = array<i64: 128, 128>}, {transform_indices = @transform_2, window_bounds = array<i64: 8, 128>}]} {
    %c0_i32 = arith.constant 0 : i32
    %0 = arith.cmpi eq, %arg2, %c0_i32 : i32
    %1 = arith.extui %0 : i1 to i32
    %c0_i32_0 = arith.constant 0 : i32
    %2 = arith.cmpi ne, %1, %c0_i32_0 : i32
    scf.if %2 {
      %cst_8 = arith.constant 0.000000e+00 : f32
      %9 = vector.broadcast %cst_8 : f32 to vector<8x128xf32>
      %c0_9 = arith.constant 0 : index
      %c0_10 = arith.constant 0 : index
      %10 = vector.load %arg5[%c0_9, %c0_10] : memref<8x128xf32, #tpu.memory_space<vmem>>, vector<8x128xf32>
      tpu.vector_store %arg5[%c0_9, %c0_10], %9 {strides = array<i32>} : memref<8x128xf32, #tpu.memory_space<vmem>>, vector<8x128xf32>,
    } else {
    }
    %c0 = arith.constant 0 : index
    %c0_1 = arith.constant 0 : index
    %3 = vector.load %arg5[%c0, %c0_1] : memref<8x128xf32, #tpu.memory_space<vmem>>, vector<8x128xf32>
    %c0_2 = arith.constant 0 : index
    %c0_3 = arith.constant 0 : index
    %4 = vector.load %arg3[%c0_2, %c0_3] : memref<8x128xf32, #tpu.memory_space<vmem>>, vector<8x128xf32>
    %c0_4 = arith.constant 0 : index
    %c0_5 = arith.constant 0 : index
    %5 = vector.load %arg4[%c0_4, %c0_5] : memref<128x128xf32, #tpu.memory_space<vmem>>, vector<128x128xf32>
    %cst = arith.constant dense<0.000000e+00> : vector<8x128xf32>
    %6 = tpu.matmul %4, %5, %cst {dimension_numbers = #tpu.dot_dimension_numbers<[1], [0], [0], [1], [0, 0, 1, 1], [], []>} : vector<8x128xf32>, vector<128x128xf32>, vector<8x128xf32> -> vector<8x128xf32>
    %7 = arith.addf %3, %6 : vector<8x128xf32>
    %c0_6 = arith.constant 0 : index
    %c0_7 = arith.constant 0 : index
    %8 = vector.load %arg5[%c0_6, %c0_7] : memref<8x128xf32, #tpu.memory_space<vmem>>, vector<8x128xf32>
    tpu.vector_store %arg5[%c0_6, %c0_7], %7 {strides = array<i32>} : memref<8x128xf32, #tpu.memory_space<vmem>>, vector<8x128xf32>,
    return
  }
  func.func @transform_0(%arg0: i32, %arg1: i32, %arg2: i32) -> (i32, i32) {
    %c0_i32 = arith.constant 0 : i32
    return %arg0, %arg2 : i32, i32
  }
  func.func @transform_1(%arg0: i32, %arg1: i32, %arg2: i32) -> (i32, i32) {
    %c0_i32 = arith.constant 0 : i32
    return %arg2, %arg1 : i32, i32
  }
  func.func @transform_2(%arg0: i32, %arg1: i32, %arg2: i32) -> (i32, i32) {
    %c0_i32 = arith.constant 0 : i32
    return %arg0, %arg1 : i32, i32
  }
}

</mosaic_0001>

<bundles_post_ra>
// kernel: tpu_custom_call.1
= control target key start
LH: loop header
LB: loop body
LE: loop exit
PB: predicated region body
PF: predicated region fallthrough
CT: control target
= control target key end

     0   :  { %7 = vsyncpa [#allocation3], 0  ;;  %s218_s0 = inlined_call_operand.hbm [shape: f32[8,128], index: 0, kind: input, shape index: {}]   ;;  %s219_s1 = inlined_call_operand.hbm [shape: f32[128,128], index: 1, kind: input, shape index: {}]   ;;  %s220_s2 = inlined_call_operand.hbm [shape: f32[8,128], index: 2, kind: output, shape index: {}]  }
   0x1   :  { %8 = vsyncpa [#allocation6], 0 }
   0x2   :  { %9 = vsyncpa [#allocation4], 0  ;;  %s15_s11 = sshll.u32 %s218_s0, 4  ;;  %s189_s12 = smov [#allocation2]   ;;  %s16_s11 = int_to_ptr.hbm [resolvable:$true] %s15_s11 }
   0x3   :  { %s17_s13 = sshll.u32 %s189_s12, 4  ;;  %s25_s16 = sshll.u32 %s219_s1, 4  ;;  %s18_s13 = int_to_ptr.vmem [resolvable:$true] %s17_s13  ;;  %s26_s16 = int_to_ptr.hbm [resolvable:$true] %s25_s16 }
   0x4   :  { %20 = dma.hbm_to_vmem [thread:$0]  %s16_s11, 128, %s18_s13, [#allocation3]  }
   0x5   :  { %s190_s17 = smov [#allocation5]   ;;  %s191_s19 = smov 128  }
   0x6   :  { %s27_s18 = sshll.u32 %s190_s17, 4  ;;  %s192_s20 = smov 8   ;;  %s28_s18 = int_to_ptr.vmem [resolvable:$true] %s27_s18 }
   0x7   :  { %33 = dma.hbm_to_vmem [thread:$0]  %s26_s16, 2048, %s28_s18, [#allocation6], %s191_s19, %s191_s19, %s192_s20  }
   0x8   :  { %183 = dma.done.wait [#allocation3], 128  }
   0x9   :  { %184 = vsyncadd [#allocation3], 4294967168 }
   0xa   :  { %185 = dma.done.wait [#allocation6], 2048  }
   0xb   :  { %186 = vsyncadd [#allocation6], 4294965248  ;;  %v64_v0 = vld [vmem:[#allocation5 + $0x78] sm:$0xff]  ;;  %v63_v1 = vld [vmem:[#allocation5 + $0x70] sm:$0xff]  ;;  %s193_s0 = smov [#allocation7]   ;;  %s94_s23 = sshll.u32 %s220_s2, 4  ;;  %s95_s23 = int_to_ptr.hbm [resolvable:$true] %s94_s23 }
   0xc   :  { %65 = vmatpush.msra.mxu0 %v64_v0  ;;  %v62_v2 = vld [vmem:[#allocation5 + $0x68] sm:$0xff]  ;;  %v61_v3 = vld [vmem:[#allocation5 + $0x60] sm:$0xff]  ;;  %v60_v4 = vld [vmem:[#allocation5 + $0x58] sm:$0xff]  ;;  %s92_s1 = sshll.u32 %s193_s0, 4  ;;  %s93_s1 = int_to_ptr.vmem [resolvable:$true] %s92_s1 }
   0xd   :  { %v59_v5 = vld [vmem:[#allocation5 + $0x50] sm:$0xff]  ;;  %v58_v6 = vld [vmem:[#allocation5 + $0x48] sm:$0xff]  ;;  %v57_v7 = vld [vmem:[#allocation5 + $0x40] sm:$0xff] }
   0xe   :  { %66 = vmatpush.msra.mxu0 %v63_v1  ;;  %v56_v8 = vld [vmem:[#allocation5 + $0x38] sm:$0xff]  ;;  %v55_v9 = vld [vmem:[#allocation5 + $0x30] sm:$0xff]  ;;  %v54_v10 = vld [vmem:[#allocation5 + $0x28] sm:$0xff] }
   0xf   :  { %v53_v11 = vld [vmem:[#allocation5 + $0x20] sm:$0xff]  ;;  %v52_v12 = vld [vmem:[#allocation5 + $0x18] sm:$0xff]  ;;  %v51_v13 = vld [vmem:[#allocation5 + $0x10] sm:$0xff] }
  0x10   :  { %67 = vmatpush.msra.mxu0 %v62_v2  ;;  %v50_v14 = vld [vmem:[#allocation5 + $0x8] sm:$0xff]  ;;  %v49_v15 = vld [vmem:[#allocation5] sm:$0xff]  ;;  %v48_v16 = vld [vmem:[#allocation2] sm:$0xff] }
  0x12   :  { %68 = vmatpush.msra.mxu0 %v61_v3 }
  0x14   :  { %69 = vmatpush.msra.mxu0 %v60_v4 }
  0x16   :  { %70 = vmatpush.msra.mxu0 %v59_v5 }
  0x18   :  { %71 = vmatpush.msra.mxu0 %v58_v6 }
  0x1a   :  { %72 = vmatpush.msra.mxu0 %v57_v7 }
  0x1c   :  { %73 = vmatpush.msra.mxu0 %v56_v8 }
  0x1e   :  { %74 = vmatpush.msra.mxu0 %v55_v9 }
  0x20   :  { %75 = vmatpush.msra.mxu0 %v54_v10 }
  0x22   :  { %76 = vmatpush.msra.mxu0 %v53_v11 }
  0x24   :  { %77 = vmatpush.msra.mxu0 %v52_v12 }
  0x26   :  { %78 = vmatpush.msra.mxu0 %v51_v13 }
  0x28   :  { %79 = vmatpush.msra.mxu0 %v50_v14 }
  0x2a   :  { %80 = vmatpush.msra.mxu0 %v49_v15 }
  0x2b   :  { %81 = vmatmul.f32.vlgmr.msra.gmra.mxu0 %v48_v16 }
  0xa8   :  { %v82_v17 = vpop.f32.mrf.mxu0 }
  0xa9   :  { %86 = vst [vmem:[#allocation7] sm:$0xff] %v82_v17 }
  0xaa   :  { %97 = dma.vmem_to_hbm [thread:$0]  %s93_s1, 128, %s95_s23, [#allocation4]  }
  0xab   :  { %187 = dma.done.wait [#allocation4], 128  }
  0xac   :  { %188 = vsyncadd [#allocation4], 4294967168 }
  0xad   :  { %102 = vsyncpa [#allocation3], 1 }
  0xae   :  { %103 = vsyncpa [#allocation6], 1 }
  0xaf   :  { %104 = vsyncpa [#allocation4], 1 }

</bundles_post_ra>
